<compile_context>
chip_gen: v7x
topology: tpu7x:2x2x1
jax: 0.10.0
libtpu: 0.0.40
codegen_flags: <defaults>
</compile_context>

<pallas_src>
import jax
import jax.numpy as jnp
import numpy as np
from jax.experimental import pallas as pl
from jax.experimental.pallas import tpu as pltpu


def _ceil_to(v, m):
    return ((v + m - 1) // m) * m


def _pad_last(arr, target):
    pad = target - arr.shape[-1]
    if pad == 0:
        return arr
    widths = [(0, 0)] * (arr.ndim - 1) + [(0, pad)]
    return jnp.pad(arr, widths)


def _pad2(arr, rows, cols):
    pr, pc = rows - arr.shape[0], cols - arr.shape[1]
    if pr == 0 and pc == 0:
        return arr
    return jnp.pad(arr, ((0, pr), (0, pc)))


def _block_diag(blocks):
    """[R, P, Q] -> (R*P, R*Q) block-diagonal matrix."""
    R, P, Q = blocks.shape
    eye = jnp.eye(R, dtype=blocks.dtype)
    return (eye[:, None, :, None] * blocks[:, :, None, :]).reshape(R * P, R * Q)


def _mrd_kernel(ta_ref, smalls_ref, xbd_ref, fcw_ref, convw_ref, u_ref, h_ref):
    """Single invocation, no grid.

    ta_ref     : (K+1, N, RNp) f32   rows 0..K-1 = lane-concat t_k, row K = lane-concat a
    smalls_ref : (K+4, Wp)     f32   rows 0..K-1 = theta_wide, K = fc_b, K+1 = conv_b,
                                     K+2 = alpha0 (broadcast), K+3 = alpha1 (broadcast)
    xbd_ref    : (RNp, RDinp)  bf16  block_diag(x)
    fcw_ref    : (RDinp, RDop) bf16  block_diag(fc_w.T)
    convw_ref  : (RDop, RDop)  bf16  kron(conv_w.T, I_Dout)
    u_ref,h_ref: (N, RDop)     f32   lane-dense outputs
    """
    K = ta_ref.shape[0] - 1
    rnp = ta_ref.shape[2]
    rdop = u_ref.shape[1]

    # S_cat = (sum_k theta_k * T_k) * A  -- (K+1) full-lane VPU FMAs, no SMEM scalars.
    coef = smalls_ref[0:1, :rnp] * ta_ref[0]
    for k in range(1, K):
        coef = coef + smalls_ref[k:k + 1, :rnp] * ta_ref[k]
    s_cat = (coef * ta_ref[K]).astype(jnp.bfloat16)                      # (N, RNp)

    # Three chained single-pass bf16 MXU matmuls with f32 accumulation.
    sx = jnp.dot(s_cat, xbd_ref[...], preferred_element_type=jnp.float32)          # all s_r @ x_r
    z = jnp.dot(sx.astype(jnp.bfloat16), fcw_ref[...],
                preferred_element_type=jnp.float32) + smalls_ref[K:K + 1, :rdop]    # all Linear_r
    u = jnp.where(z > 0.0, z, smalls_ref[K + 2:K + 3, :rdop] * z)                   # PReLU (activation0)
    u_ref[...] = u

    hz = jnp.dot(u.astype(jnp.bfloat16), convw_ref[...],
                 preferred_element_type=jnp.float32) + smalls_ref[K + 1:K + 2, :rdop]  # 1x1 Conv2d
    h_ref[...] = jnp.where(hz > 0.0, hz, smalls_ref[K + 3:K + 4, :rdop] * hz)          # PReLU (activation1)


def make_multi_re_diffusion(params):
    """Build the forward fn once per model; weight-derived constants are hoisted here."""
    fc_w = jnp.asarray(params["fc_w"], jnp.float32)              # [R, Dout, Din]
    fc_b = jnp.asarray(params["fc_b"], jnp.float32)              # [R, Dout]
    conv_w = jnp.asarray(params["conv_w"], jnp.float32)          # [R, R, 1, 1]
    conv_b = jnp.asarray(params["conv_b"], jnp.float32)          # [R]
    alpha0 = jnp.asarray(params["alpha0"], jnp.float32).reshape(())
    alpha1 = jnp.asarray(params["alpha1"], jnp.float32).reshape(())
    R, Dout, Din = fc_w.shape

    rdi = _ceil_to(R * Din, 128)
    rdo = _ceil_to(R * Dout, 128)

    # block_diag(fc_w.T): ONE (RDinp, RDop) matmul applies all R Linear layers.
    fc_w_bd = _pad2(_block_diag(jnp.transpose(fc_w, (0, 2, 1))), rdi, rdo).astype(jnp.bfloat16)
    # kron(conv_w.T, I_Dout): the 1x1 relation-mixing Conv2d as ONE matmul.
    w2 = conv_w[:, :, 0, 0]                                      # [R_out, R_in]
    conv_w_big = _pad2(jnp.kron(w2.T, jnp.eye(Dout, dtype=jnp.float32)), rdo, rdo).astype(jnp.bfloat16)

    # Constant rows of the packed "smalls" slab (theta rows are prepended per call).
    fc_b_wide = fc_b.reshape(1, R * Dout)
    conv_b_wide = jnp.repeat(conv_b, Dout).reshape(1, R * Dout)
    a0_row = jnp.full((1, R * Dout), alpha0, jnp.float32)
    a1_row = jnp.full((1, R * Dout), alpha1, jnp.float32)
    const_rows = jnp.concatenate([fc_b_wide, conv_b_wide, a0_row, a1_row], axis=0)  # (4, R*Dout)

    @jax.jit
    def forward(theta, t, a, x):
        Rr, K = theta.shape
        N = a.shape[1]
        assert Rr == R and x.shape[-1] == Din
        rn = _ceil_to(R * N, 128)        # lane-pad so VPU ops and the MXU K-dim are full width
        wp = max(rn, rdo)

        # --- per-call layout plumbing (inside the same jit as the kernel) ---
        t_wide = _pad_last(jnp.transpose(t, (1, 2, 0, 3)).reshape(K, N, R * N), rn)
        a_wide = _pad_last(jnp.transpose(a, (1, 0, 2)).reshape(N, R * N), rn)
        ta = jnp.concatenate([t_wide, a_wide[None]], axis=0).astype(jnp.float32)     # (K+1, N, RNp)

        theta_wide = _pad_last(jnp.repeat(theta.T.astype(jnp.float32), N, axis=1), wp)  # (K, Wp)
        smalls = jnp.concatenate([theta_wide, _pad_last(const_rows, wp)], axis=0)       # (K+4, Wp)

        x_bd = _pad2(_block_diag(x.astype(jnp.float32)), rn, rdi).astype(jnp.bfloat16)  # (RNp, RDinp)

        flops = 2 * N * (rn * rdi + rdi * rdo + rdo * rdo)
        bytes_accessed = (ta.size * 4 + smalls.size * 4 + x_bd.size * 2
                          + fc_w_bd.size * 2 + conv_w_big.size * 2 + 2 * N * rdo * 4)

        vmem = pl.BlockSpec(memory_space=pltpu.MemorySpace.VMEM)
        u_wide, h_wide = pl.pallas_call(
            _mrd_kernel,
            out_shape=(jax.ShapeDtypeStruct((N, rdo), jnp.float32),   # u (lane-dense)
                       jax.ShapeDtypeStruct((N, rdo), jnp.float32)),  # h (lane-dense)
            in_specs=[vmem, vmem, vmem, vmem, vmem],
            out_specs=(vmem, vmem),
            cost_estimate=pl.CostEstimate(flops=flops, transcendentals=0,
                                          bytes_accessed=bytes_accessed),
        )(ta, smalls, x_bd, fc_w_bd, conv_w_big)

        u = jnp.transpose(u_wide[:, :R * Dout].reshape(N, R, Dout), (1, 0, 2))  # [R, N, Dout]
        h = jnp.transpose(h_wide[:, :R * Dout].reshape(N, R, Dout), (1, 0, 2))  # [R, N, Dout]
        # PyTorch forward returns (h, u); `.to('cuda')` is just a device move (no-op here).
        return h, u

    return forward


def reference(theta, t, a, x, params):
    fc_w, fc_b = params["fc_w"], params["fc_b"]
    conv_w, conv_b = params["conv_w"], params["conv_b"]
    a0, a1 = params["alpha0"], params["alpha1"]
    coef = jnp.einsum("rk,rkmn->rmn", theta, t)
    s = coef * a
    sx = jnp.einsum("rmn,rnd->rmd", s, x)
    z = jnp.einsum("rmd,rod->rmo", sx, fc_w) + fc_b[:, None, :]
    u = jnp.where(z > 0, z, a0 * z)
    w2 = conv_w[:, :, 0, 0]
    h = jnp.einsum("or,rnd->ond", w2, u) + conv_b[:, None, None]
    h = jnp.where(h > 0, h, a1 * h)
    return h, u


if __name__ == "__main__":
    # num_relation=4, diffusion steps K=3, nodes N=16, input_dim=32, output_dim=32
    R, K, N, Din, Dout = 4, 3, 16, 32, 32
    key = jax.random.PRNGKey(0)
    ks = jax.random.split(key, 8)

    theta = jax.random.uniform(ks[0], (R, K), jnp.float32)
    t = jax.random.normal(ks[1], (R, K, N, N), jnp.float32) * 0.1
    a = (jax.random.uniform(ks[2], (R, N, N), jnp.float32) < 0.3).astype(jnp.float32)
    x = jax.random.normal(ks[3], (R, N, Din), jnp.float32)

    params = {
        "fc_w": jax.random.normal(ks[4], (R, Dout, Din), jnp.float32) / np.sqrt(Din),
        "fc_b": jax.random.normal(ks[5], (R, Dout), jnp.float32) * 0.01,
        "conv_w": jax.random.normal(ks[6], (R, R, 1, 1), jnp.float32) / np.sqrt(R),
        "conv_b": jax.random.normal(ks[7], (R,), jnp.float32) * 0.01,
        "alpha0": jnp.array(0.25, jnp.float32),   # PReLU default init
        "alpha1": jnp.array(0.25, jnp.float32),   # PReLU default init
    }

    forward = make_multi_re_diffusion(params)     # constants built once per model
    h, u = forward(theta, t, a, x)
    jax.block_until_ready((h, u))

    h_ref, u_ref = reference(theta, t, a, x, params)
    # bf16 single-pass MXU operands (f32 accumulation) => relaxed tolerance vs f32 reference.
    assert np.allclose(np.asarray(u), np.asarray(u_ref), rtol=3e-2, atol=3e-2)
    assert np.allclose(np.asarray(h), np.asarray(h_ref), rtol=3e-2, atol=3e-2)
    print("KERNEL_OK")
</pallas_src>

<mosaic_0001>
module attributes {stable_mosaic.version = 11 : i64} {
  func.func @_mrd_kernel(%arg0: memref<4x16x128xf32, #tpu.memory_space<vmem>>, %arg1: memref<7x128xf32, #tpu.memory_space<vmem>>, %arg2: memref<128x128xbf16, #tpu.memory_space<vmem>>, %arg3: memref<128x128xbf16, #tpu.memory_space<vmem>>, %arg4: memref<128x128xbf16, #tpu.memory_space<vmem>>, %arg5: memref<16x128xf32, #tpu.memory_space<vmem>>, %arg6: memref<16x128xf32, #tpu.memory_space<vmem>>) attributes {dimension_semantics = [], scalar_prefetch = 0 : i64, scratch_operands = 0 : i64, tpu.core_type = #tpu.core_type<tc>} {
    %c0 = arith.constant 0 : index
    %c0_0 = arith.constant 0 : index
    %0 = vector.load %arg1[%c0, %c0_0] : memref<7x128xf32, #tpu.memory_space<vmem>>, vector<1x128xf32>
    %c0_1 = arith.constant 0 : index
    %c0_2 = arith.constant 0 : index
    %c0_3 = arith.constant 0 : index
    %1 = vector.load %arg0[%c0_1, %c0_2, %c0_3] : memref<4x16x128xf32, #tpu.memory_space<vmem>>, vector<1x16x128xf32>
    %2 = vector.shape_cast %1 : vector<1x16x128xf32> to vector<16x128xf32>
    %3 = vector.broadcast %0 : vector<1x128xf32> to vector<16x128xf32>
    %4 = arith.mulf %3, %2 : vector<16x128xf32>
    %c1 = arith.constant 1 : index
    %c0_4 = arith.constant 0 : index
    %5 = vector.load %arg1[%c1, %c0_4] : memref<7x128xf32, #tpu.memory_space<vmem>>, vector<1x128xf32>
    %c1_5 = arith.constant 1 : index
    %c0_6 = arith.constant 0 : index
    %c0_7 = arith.constant 0 : index
    %6 = vector.load %arg0[%c1_5, %c0_6, %c0_7] : memref<4x16x128xf32, #tpu.memory_space<vmem>>, vector<1x16x128xf32>
    %7 = vector.shape_cast %6 : vector<1x16x128xf32> to vector<16x128xf32>
    %8 = vector.broadcast %5 : vector<1x128xf32> to vector<16x128xf32>
    %9 = arith.mulf %8, %7 : vector<16x128xf32>
    %10 = arith.addf %4, %9 : vector<16x128xf32>
    %c2 = arith.constant 2 : index
    %c0_8 = arith.constant 0 : index
    %11 = vector.load %arg1[%c2, %c0_8] : memref<7x128xf32, #tpu.memory_space<vmem>>, vector<1x128xf32>
    %c2_9 = arith.constant 2 : index
    %c0_10 = arith.constant 0 : index
    %c0_11 = arith.constant 0 : index
    %12 = vector.load %arg0[%c2_9, %c0_10, %c0_11] : memref<4x16x128xf32, #tpu.memory_space<vmem>>, vector<1x16x128xf32>
    %13 = vector.shape_cast %12 : vector<1x16x128xf32> to vector<16x128xf32>
    %14 = vector.broadcast %11 : vector<1x128xf32> to vector<16x128xf32>
    %15 = arith.mulf %14, %13 : vector<16x128xf32>
    %16 = arith.addf %10, %15 : vector<16x128xf32>
    %c3 = arith.constant 3 : index
    %c0_12 = arith.constant 0 : index
    %c0_13 = arith.constant 0 : index
    %17 = vector.load %arg0[%c3, %c0_12, %c0_13] : memref<4x16x128xf32, #tpu.memory_space<vmem>>, vector<1x16x128xf32>
    %18 = vector.shape_cast %17 : vector<1x16x128xf32> to vector<16x128xf32>
    %19 = arith.mulf %16, %18 : vector<16x128xf32>
    %20 = arith.truncf %19 : vector<16x128xf32> to vector<16x128xbf16>
    %c0_14 = arith.constant 0 : index
    %c0_15 = arith.constant 0 : index
    %21 = vector.load %arg2[%c0_14, %c0_15] : memref<128x128xbf16, #tpu.memory_space<vmem>>, vector<128x128xbf16>
    %cst = arith.constant dense<0.000000e+00> : vector<16x128xf32>
    %22 = tpu.matmul %20, %21, %cst {dimension_numbers = #tpu.dot_dimension_numbers<[1], [0], [0], [1], [0, 0, 1, 1], [], []>} : vector<16x128xbf16>, vector<128x128xbf16>, vector<16x128xf32> -> vector<16x128xf32>
    %23 = arith.truncf %22 : vector<16x128xf32> to vector<16x128xbf16>
    %c0_16 = arith.constant 0 : index
    %c0_17 = arith.constant 0 : index
    %24 = vector.load %arg3[%c0_16, %c0_17] : memref<128x128xbf16, #tpu.memory_space<vmem>>, vector<128x128xbf16>
    %cst_18 = arith.constant dense<0.000000e+00> : vector<16x128xf32>
    %25 = tpu.matmul %23, %24, %cst_18 {dimension_numbers = #tpu.dot_dimension_numbers<[1], [0], [0], [1], [0, 0, 1, 1], [], []>} : vector<16x128xbf16>, vector<128x128xbf16>, vector<16x128xf32> -> vector<16x128xf32>
    %c3_19 = arith.constant 3 : index
    %c0_20 = arith.constant 0 : index
    %26 = vector.load %arg1[%c3_19, %c0_20] : memref<7x128xf32, #tpu.memory_space<vmem>>, vector<1x128xf32>
    %27 = vector.broadcast %26 : vector<1x128xf32> to vector<16x128xf32>
    %28 = arith.addf %25, %27 : vector<16x128xf32>
    %cst_21 = arith.constant 0.000000e+00 : f32
    %29 = vector.broadcast %cst_21 : f32 to vector<16x128xf32>
    %30 = arith.cmpf ogt, %28, %29 : vector<16x128xf32>
    %c5 = arith.constant 5 : index
    %c0_22 = arith.constant 0 : index
    %31 = vector.load %arg1[%c5, %c0_22] : memref<7x128xf32, #tpu.memory_space<vmem>>, vector<1x128xf32>
    %32 = vector.broadcast %31 : vector<1x128xf32> to vector<16x128xf32>
    %33 = arith.mulf %32, %28 : vector<16x128xf32>
    %34 = arith.select %30, %28, %33 : vector<16x128xi1>, vector<16x128xf32>
    %c0_23 = arith.constant 0 : index
    %c0_24 = arith.constant 0 : index
    %35 = vector.load %arg5[%c0_23, %c0_24] : memref<16x128xf32, #tpu.memory_space<vmem>>, vector<16x128xf32>
    tpu.vector_store %arg5[%c0_23, %c0_24], %34 {strides = array<i32>} : memref<16x128xf32, #tpu.memory_space<vmem>>, vector<16x128xf32>,
    %36 = arith.truncf %34 : vector<16x128xf32> to vector<16x128xbf16>
    %c0_25 = arith.constant 0 : index
    %c0_26 = arith.constant 0 : index
    %37 = vector.load %arg4[%c0_25, %c0_26] : memref<128x128xbf16, #tpu.memory_space<vmem>>, vector<128x128xbf16>
    %cst_27 = arith.constant dense<0.000000e+00> : vector<16x128xf32>
    %38 = tpu.matmul %36, %37, %cst_27 {dimension_numbers = #tpu.dot_dimension_numbers<[1], [0], [0], [1], [0, 0, 1, 1], [], []>} : vector<16x128xbf16>, vector<128x128xbf16>, vector<16x128xf32> -> vector<16x128xf32>
    %c4 = arith.constant 4 : index
    %c0_28 = arith.constant 0 : index
    %39 = vector.load %arg1[%c4, %c0_28] : memref<7x128xf32, #tpu.memory_space<vmem>>, vector<1x128xf32>
    %40 = vector.broadcast %39 : vector<1x128xf32> to vector<16x128xf32>
    %41 = arith.addf %38, %40 : vector<16x128xf32>
    %cst_29 = arith.constant 0.000000e+00 : f32
    %42 = vector.broadcast %cst_29 : f32 to vector<16x128xf32>
    %43 = arith.cmpf ogt, %41, %42 : vector<16x128xf32>
    %c6 = arith.constant 6 : index
    %c0_30 = arith.constant 0 : index
    %44 = vector.load %arg1[%c6, %c0_30] : memref<7x128xf32, #tpu.memory_space<vmem>>, vector<1x128xf32>
    %45 = vector.broadcast %44 : vector<1x128xf32> to vector<16x128xf32>
    %46 = arith.mulf %45, %41 : vector<16x128xf32>
    %47 = arith.select %43, %41, %46 : vector<16x128xi1>, vector<16x128xf32>
    %c0_31 = arith.constant 0 : index
    %c0_32 = arith.constant 0 : index
    %48 = vector.load %arg6[%c0_31, %c0_32] : memref<16x128xf32, #tpu.memory_space<vmem>>, vector<16x128xf32>
    tpu.vector_store %arg6[%c0_31, %c0_32], %47 {strides = array<i32>} : memref<16x128xf32, #tpu.memory_space<vmem>>, vector<16x128xf32>,
    return
  }
}

</mosaic_0001>

<bundles_post_ra>
// kernel: forward.1
= control target key start
LH: loop header
LB: loop body
LE: loop exit
PB: predicated region body
PF: predicated region fallthrough
CT: control target
= control target key end

     0   :  { %v573_v0 = vmov 0.0   ;;  %vm574_vm0 = vmmov 0   ;;  %s769_s2 = inlined_call_operand.vmem [shape: bf16[128,128], index: 2, kind: input, shape index: {}]   ;;  %s770_s0 = inlined_call_operand.vmem [shape: f32[4,16,128], index: 0, kind: input, shape index: {}]   ;;  %s771_s1 = inlined_call_operand.vmem [shape: f32[7,128], index: 1, kind: input, shape index: {}]   ;;  %s772_s3 = inlined_call_operand.vmem [shape: bf16[128,128], index: 3, kind: input, shape index: {}]   ;;  %s773_s4 = inlined_call_operand.vmem [shape: bf16[128,128], index: 4, kind: input, shape index: {}]   ;;  %s774_s5 = inlined_call_operand.vmem [shape: f32[16,128], index: 5, kind: output, shape index: {0}]   ;;  %s775_s6 = inlined_call_operand.vmem [shape: f32[16,128], index: 6, kind: output, shape index: {1}]  }
   0x1   :  { %487 = vmatprep.subr.bf16.mxu0 %v573_v0  ;;  %v549_v1 = vld [vmem:[%s769_s2] sm:$0xff]   ;;  %503 = vmatprep.mubr.msk.bf16.mxu0 %vm574_vm0, %v573_v0  ;;  %v550_v2 = vld [vmem:[%s769_s2 + $0x8] sm:$0xff]   ;;  %v551_v3 = vld [vmem:[%s769_s2 + $0x10] sm:$0xff]  }
   0x2   :  { %507 = vmatprep.subr.bf16.mxu1 %v573_v0  ;;  %523 = vmatprep.mubr.msk.bf16.mxu1 %vm574_vm0, %v573_v0  ;;  %v552_v4 = vld [vmem:[%s769_s2 + $0x18] sm:$0xff]   ;;  %v423_v5 = vld [vmem:[%s771_s1] ss:$0 sm:$0xff]  ;;  %v25_v7 = vld [vmem:[%s770_s0 + $0x8] sm:$0xff] }
   0x3   :  { %488 = vmatpush3.bf16.msra.mxu0 %v549_v1  ;;  %v24_v6 = vld [vmem:[%s770_s0] sm:$0xff]  ;;  %v424_v9 = vld [vmem:[%s770_s0 + $0x10] sm:$0xff]  ;;  %v425_v10 = vld [vmem:[%s770_s0 + $0x18] sm:$0xff]  ;;  %v31_v16 = vmul.f32 %v423_v5, %v25_v7 }
   0x4   :  { %489 = vmatprep.subr.bf16.mxu0 %v573_v0  ;;  %v426_v8 = vld [vmem:[%s771_s1 + $0x1] ss:$0 sm:$0xff]  ;;  %v429_v12 = vld [vmem:[%s771_s1 + $0x2] ss:$0 sm:$0xff]  ;;  %v30_v15 = vmul.f32 %v423_v5, %v24_v6  ;;  %v428_v19 = vld [vmem:[%s770_s0 + $0x28] sm:$0xff] }
   0x5   :  { %v553_v11 = vld [vmem:[%s769_s2 + $0x20] sm:$0xff]   ;;  %v40_v17 = vmul.f32 %v426_v8, %v424_v9  ;;  %v41_v18 = vmul.f32 %v426_v8, %v425_v10  ;;  %v558_v20 = vld [vmem:[%s772_s3 + $0x8] sm:$0xff]   ;;  %v53_v25 = vmul.f32 %v429_v12, %v428_v19  ;;  %v559_v26 = vld [vmem:[%s772_s3 + $0x10] sm:$0xff]  }
   0x6   :  { %v427_v13 = vld [vmem:[%s770_s0 + $0x20] sm:$0xff]  ;;  %v554_v21 = vld [vmem:[%s769_s2 + $0x28] sm:$0xff]   ;;  %v555_v27 = vld [vmem:[%s769_s2 + $0x30] sm:$0xff]  }
   0x7   :  { %490 = vmatpush3.bf16.msra.mxu0 %v550_v2  ;;  %v557_v14 = vld [vmem:[%s772_s3] sm:$0xff]   ;;  %v42_v22 = vadd.f32 %v40_v17, %v30_v15  ;;  %v43_v23 = vadd.f32 %v41_v18, %v31_v16  ;;  %v52_v24 = vmul.f32 %v429_v12, %v427_v13  ;;  %v430_v30 = vld [vmem:[%s770_s0 + $0x30] sm:$0xff]  ;;  %v431_v31 = vld [vmem:[%s770_s0 + $0x38] sm:$0xff] }
   0x8   :  { %491 = vmatprep.subr.bf16.mxu0 %v573_v0  ;;  %508 = vmatpush3.bf16.msra.mxu1 %v557_v14  ;;  %v560_v32 = vld [vmem:[%s772_s3 + $0x18] sm:$0xff]   ;;  %v561_v36 = vld [vmem:[%s772_s3 + $0x20] sm:$0xff]   ;;  %v562_v38 = vld [vmem:[%s772_s3 + $0x28] sm:$0xff]  }
   0x9   :  { %509 = vmatprep.subr.bf16.mxu1 %v573_v0  ;;  %v54_v28 = vadd.f32 %v52_v24, %v42_v22  ;;  %v55_v29 = vadd.f32 %v53_v25, %v43_v23  ;;  %v556_v35 = vld [vmem:[%s769_s2 + $0x38] sm:$0xff]   ;;  %v563_v39 = vld [vmem:[%s772_s3 + $0x30] sm:$0xff]   ;;  %v565_v41 = vld [vmem:[%s773_s4] sm:$0xff]  }
   0xa   :  { %v564_v40 = vld [vmem:[%s772_s3 + $0x38] sm:$0xff]   ;;  %v566_v42 = vld [vmem:[%s773_s4 + $0x8] sm:$0xff]   ;;  %v567_v43 = vld [vmem:[%s773_s4 + $0x10] sm:$0xff]  }
   0xb   :  { %492 = vmatpush3.bf16.msra.mxu0 %v551_v3  ;;  %v59_v33 = vmul.f32 %v430_v30, %v54_v28  ;;  %v60_v34 = vmul.f32 %v431_v31, %v55_v29  ;;  %v568_v44 = vld [vmem:[%s773_s4 + $0x18] sm:$0xff]   ;;  %v569_v45 = vld [vmem:[%s773_s4 + $0x20] sm:$0xff]   ;;  %v570_v46 = vld [vmem:[%s773_s4 + $0x28] sm:$0xff]  }
   0xc   :  { %493 = vmatprep.subr.bf16.mxu0 %v573_v0  ;;  %510 = vmatpush3.bf16.msra.mxu1 %v558_v20  ;;  %v571_v52 = vld [vmem:[%s773_s4 + $0x30] sm:$0xff]   ;;  %v572_v53 = vld [vmem:[%s773_s4 + $0x38] sm:$0xff]   ;;  %v440_v54 = vld [vmem:[%s771_s1 + $0x3] ss:$0 sm:$0xff] }
   0xd   :  { %511 = vmatprep.subr.bf16.mxu1 %v573_v0  ;;  %v61_v37 = vpack.c.bf16 %v60_v34, %v59_v33  ;;  %v449_v56 = vld [vmem:[%s771_s1 + $0x5] ss:$0 sm:$0xff]  ;;  %v450_v3 = vld [vmem:[%s771_s1 + $0x4] ss:$0 sm:$0xff]  ;;  %v459_v5 = vld [vmem:[%s771_s1 + $0x6] ss:$0 sm:$0xff] }
   0xf   :  { %494 = vmatpush3.bf16.msra.mxu0 %v552_v4 }
  0x10   :  { %495 = vmatprep.subr.bf16.mxu0 %v573_v0  ;;  %512 = vmatpush3.bf16.msra.mxu1 %v559_v26 }
  0x11   :  { %513 = vmatprep.subr.bf16.mxu1 %v573_v0 }
  0x13   :  { %496 = vmatpush3.bf16.msra.mxu0 %v553_v11 }
  0x14   :  { %497 = vmatprep.subr.bf16.mxu0 %v573_v0  ;;  %514 = vmatpush3.bf16.msra.mxu1 %v560_v32 }
  0x15   :  { %515 = vmatprep.subr.bf16.mxu1 %v573_v0 }
  0x17   :  { %498 = vmatpush3.bf16.msra.mxu0 %v554_v21 }
  0x18   :  { %499 = vmatprep.subr.bf16.mxu0 %v573_v0  ;;  %516 = vmatpush3.bf16.msra.mxu1 %v561_v36 }
  0x19   :  { %517 = vmatprep.subr.bf16.mxu1 %v573_v0 }
  0x1b   :  { %500 = vmatpush3.bf16.msra.mxu0 %v555_v27 }
  0x1c   :  { %501 = vmatprep.subr.bf16.mxu0 %v573_v0  ;;  %518 = vmatpush3.bf16.msra.mxu1 %v562_v38 }
  0x1d   :  { %519 = vmatprep.subr.bf16.mxu1 %v573_v0 }
  0x1f   :  { %502 = vmatpush3.bf16.msra.mxu0 %v556_v35 }
  0x20   :  { %527 = vmatprep.subr.bf16.mxu0 %v573_v0  ;;  %520 = vmatpush3.bf16.msra.mxu1 %v563_v39 }
  0x21   :  { %521 = vmatprep.subr.bf16.mxu1 %v573_v0 }
  0x22   :  { %504 = vmatmul.mubr.bf16.vlgmr.msra.gmra.mrb[0].mxu0 %v61_v37 }
  0x23   :  { %543 = vmatprep.mubr.msk.bf16.mxu0 %vm574_vm0, %v573_v0  ;;  %528 = vmatpush3.bf16.msra.mxu0 %v565_v41 }
  0x24   :  { %522 = vmatpush3.bf16.msra.mxu1 %v564_v40  ;;  %529 = vmatprep.subr.bf16.mxu0 %v573_v0 }
  0x27   :  { %530 = vmatpush3.bf16.msra.mxu0 %v566_v42 }
  0x28   :  { %531 = vmatprep.subr.bf16.mxu0 %v573_v0 }
  0x2b   :  { %532 = vmatpush3.bf16.msra.mxu0 %v567_v43 }
  0x2c   :  { %533 = vmatprep.subr.bf16.mxu0 %v573_v0 }
  0x2f   :  { %534 = vmatpush3.bf16.msra.mxu0 %v568_v44 }
  0x30   :  { %535 = vmatprep.subr.bf16.mxu0 %v573_v0 }
  0x33   :  { %536 = vmatpush3.bf16.msra.mxu0 %v569_v45 }
  0x34   :  { %537 = vmatprep.subr.bf16.mxu0 %v573_v0 }
  0x37   :  { %538 = vmatpush3.bf16.msra.mxu0 %v570_v46 }
  0x38   :  { %539 = vmatprep.subr.bf16.mxu0 %v573_v0 }
  0x3b   :  { %540 = vmatpush3.bf16.msra.mxu0 %v571_v52 }
  0x3c   :  { %541 = vmatprep.subr.bf16.mxu0 %v573_v0 }
  0x3f   :  { %542 = vmatpush3.bf16.msra.mxu0 %v572_v53 }
  0xf5   :  { %v160_v47 = vpop.f32.mrb[0].mxu0 }
  0xf6   :  { %v505_v48 = vpop.f32.mrb[1].mxu0 }
  0xf7   :  { %v163_v49 = vpop.f32.mrb[2].mxu0 }
  0xf8   :  { %v167_v50 = vpack.c.bf16 %v163_v49, %v160_v47  ;;  %v506_v51 = vpop.f32.mrb[3].mxu0 }
  0xfa   :  { %524 = vmatmul.mubr.bf16.vlgmr.msra.gmra.mrb[0].mxu1 %v167_v50 }
 0x1cd   :  { %v271_v55 = vpop.f32.mrb[0].mxu1 }
 0x1ce   :  { %v272_v57 = vadd.f32 %v440_v54, %v271_v55  ;;  %v525_v58 = vpop.f32.mrb[1].mxu1 }
 0x1cf   :  { %v274_v59 = vpop.f32.mrb[2].mxu1 }
 0x1d0   :  { %vm278_vm1 = vcmp.gt.f32.partialorder %v272_v57, 0.0  ;;  %v285_v60 = vmul.f32 %v449_v56, %v272_v57  ;;  %v275_v61 = vadd.f32 %v440_v54, %v274_v59  ;;  %v526_v62 = vpop.f32.mrb[3].mxu1 }
 0x1d2   :  { %v287_v63 = vsel %vm278_vm1, %v272_v57, %v285_v60  ;;  %vm279_vm2 = vcmp.gt.f32.partialorder %v275_v61, 0.0  ;;  %v286_v0 = vmul.f32 %v449_v56, %v275_v61 }
 0x1d3   :  { %289 = vst [vmem:[%s774_s5] sm:$0xff] %v287_v63 }
 0x1d4   :  { %v288_v1 = vsel %vm279_vm2, %v275_v61, %v286_v0 }
 0x1d5   :  { %290 = vst [vmem:[%s774_s5 + $0x8] sm:$0xff] %v288_v1  ;;  %v291_v2 = vpack.c.bf16 %v288_v1, %v287_v63 }
 0x1d7   :  { %544 = vmatmul.mubr.bf16.vlgmr.msra.gmra.mrb[4].mxu0 %v291_v2 }
 0x2aa   :  { %v395_v4 = vpop.f32.mrb[4].mxu0 }
 0x2ab   :  { %v396_v6 = vadd.f32 %v450_v3, %v395_v4  ;;  %v545_v7 = vpop.f32.mrb[5].mxu0 }
 0x2ac   :  { %v398_v8 = vpop.f32.mrb[6].mxu0 }
 0x2ad   :  { %vm402_vm3 = vcmp.gt.f32.partialorder %v396_v6, 0.0  ;;  %v409_v9 = vmul.f32 %v459_v5, %v396_v6  ;;  %v399_v10 = vadd.f32 %v450_v3, %v398_v8  ;;  %v546_v11 = vpop.f32.mrb[7].mxu0 }
 0x2af   :  { %v411_v12 = vsel %vm402_vm3, %v396_v6, %v409_v9  ;;  %vm403_vm4 = vcmp.gt.f32.partialorder %v399_v10, 0.0  ;;  %v410_v13 = vmul.f32 %v459_v5, %v399_v10 }
 0x2b0   :  { %413 = vst [vmem:[%s775_s6] sm:$0xff] %v411_v12 }
 0x2b1   :  { %v412_v14 = vsel %vm403_vm4, %v399_v10, %v410_v13 }
 0x2b2   :  { %414 = vst [vmem:[%s775_s6 + $0x8] sm:$0xff] %v412_v14 }

</bundles_post_ra>
